<compile_context>
chip_gen: v6e
topology: v6e:2x2x1
jax: 0.10.0
libtpu: 0.0.40
codegen_flags: <defaults>
</compile_context>

<pallas_src>
import jax
import jax.numpy as jnp
from jax.experimental import pallas as pl
from jax.experimental.pallas import tpu as pltpu


def _swish(v):
    # swish(x) = x * sigmoid(x); exp + reciprocal both land on the EUP slot.
    return v * pl.reciprocal(1.0 + jnp.exp(-v), approx=False)


# ---------------------------------------------------------------------------
# Fused kernel: t = swish(x @ W1 + b1); out = x + swish(t @ W2 + b2)
# ---------------------------------------------------------------------------
def _residual_layer_kernel(x_ref, w1_ref, b1_ref, w2_ref, b2_ref, o_ref):
    x = x_ref[...]
    t = _swish(jnp.dot(x, w1_ref[...],
                       preferred_element_type=jnp.float32) + b1_ref[...])
    y = _swish(jnp.dot(t, w2_ref[...],
                       preferred_element_type=jnp.float32) + b2_ref[...])
    o_ref[...] = x + y


def _block_diag(w, copies):
    """(H, H) -> (copies*H, copies*H) block-diagonal replication."""
    h = w.shape[0]
    out = jnp.zeros((copies * h, copies * h), w.dtype)
    for g in range(copies):
        out = out.at[g * h:(g + 1) * h, g * h:(g + 1) * h].set(w)
    return out


# ---------------------------------------------------------------------------
# Wrapper
# ---------------------------------------------------------------------------
def residual_layer_pallas(params, x, *, row_tile=2048):
    """x: (N, H) f32. Weights stored as [in, out] (= torch weight.T), biases (1, H)."""
    N, H = x.shape
    W1, b1 = params["W1"], params["b1"]
    W2, b2 = params["W2"], params["b2"]

    # --- lane packing: fold `pack` consecutive rows into one 128-lane row ----
    pack = 128 // H if (H < 128 and 128 % H == 0) else 1
    n_row_pad = (-N) % pack                      # at most pack-1 (= 3) rows
    x_in = jnp.pad(x, ((0, n_row_pad), (0, 0))) if n_row_pad else x
    Np = N + n_row_pad

    if pack > 1:
        x_in = x_in.reshape(Np // pack, pack * H)   # contiguous -> free reshape
        W1 = _block_diag(W1, pack)
        W2 = _block_diag(W2, pack)
        b1 = jnp.tile(b1, (1, pack))
        b2 = jnp.tile(b2, (1, pack))

    Rp, Hp = x_in.shape                             # packed rows / packed lanes

    # --- row tile (in packed rows) -------------------------------------------
    # Big tiles amortize the ~0.35us/step overhead; clamp so the grid keeps
    # >= 2 steps when there is enough work (both v7x TensorCores busy).
    ceil8 = lambda v: ((v + 7) // 8) * 8
    tile = max(8, ceil8(max(1, row_tile // pack)))
    if Rp > 16:
        tile = min(tile, ceil8(pl.cdiv(Rp, 2)))
    tile = min(tile, ceil8(Rp))
    n_tiles = pl.cdiv(Rp, tile)

    out = pl.pallas_call(
        _residual_layer_kernel,
        grid=(n_tiles,),
        in_specs=[
            pl.BlockSpec((tile, Hp), lambda i: (i, 0)),   # x tile
            pl.BlockSpec((Hp, Hp), lambda i: (0, 0)),     # W1 (replicated)
            pl.BlockSpec((1, Hp), lambda i: (0, 0)),      # b1
            pl.BlockSpec((Hp, Hp), lambda i: (0, 0)),     # W2
            pl.BlockSpec((1, Hp), lambda i: (0, 0)),      # b2
        ],
        out_specs=pl.BlockSpec((tile, Hp), lambda i: (i, 0)),
        out_shape=jax.ShapeDtypeStruct((Rp, Hp), jnp.float32),
        compiler_params=pltpu.CompilerParams(
            dimension_semantics=("parallel",)),
    )(x_in, W1, b1, W2, b2)

    if pack > 1:
        out = out.reshape(Np, H)
    return out[:N] if n_row_pad else out


# ---------------------------------------------------------------------------
# Pure-JAX reference (mirrors the PyTorch forward exactly)
# ---------------------------------------------------------------------------
def residual_layer_ref(params, x):
    sw = lambda v: v * jax.nn.sigmoid(v)
    t = sw(x @ params["W1"] + params["b1"])
    return x + sw(t @ params["W2"] + params["b2"])


def make_params(key, hidden):
    k1, k2, k3, k4 = jax.random.split(key, 4)
    scale = 1.0 / hidden ** 0.5
    return {
        # Stored as [in, out] (= torch Linear weight.T); biases as [1, H].
        "W1": jax.random.normal(k1, (hidden, hidden), jnp.float32) * scale,
        "b1": jax.random.normal(k2, (1, hidden), jnp.float32) * 0.05,
        "W2": jax.random.normal(k3, (hidden, hidden), jnp.float32) * scale,
        "b2": jax.random.normal(k4, (1, hidden), jnp.float32) * 0.05,
    }


if __name__ == "__main__":
    hidden_channels = 32
    num_rows = 200          # not a multiple of the row tile (partial last block)

    key = jax.random.PRNGKey(0)
    k_params, k_x = jax.random.split(key, 2)

    params = make_params(k_params, hidden_channels)
    x = jax.random.normal(k_x, (num_rows, hidden_channels), jnp.float32)

    out = residual_layer_pallas(params, x)
    out = jax.block_until_ready(out)

    ref = jax.block_until_ready(residual_layer_ref(params, x))

    assert out.shape == (num_rows, hidden_channels)
    assert jnp.allclose(out, ref, atol=1e-4, rtol=1e-4), (
        "Pallas output does not match JAX reference")
    print("KERNEL_OK")
</pallas_src>

<mosaic_0001>
module attributes {stable_mosaic.version = 11 : i64} {
  func.func @_residual_layer_kernel(%arg0: i32, %arg1: memref<32x128xf32, #tpu.memory_space<vmem>>, %arg2: memref<128x128xf32, #tpu.memory_space<vmem>>, %arg3: memref<1x128xf32, #tpu.memory_space<vmem>>, %arg4: memref<128x128xf32, #tpu.memory_space<vmem>>, %arg5: memref<1x128xf32, #tpu.memory_space<vmem>>, %arg6: memref<32x128xf32, #tpu.memory_space<vmem>>) attributes {dimension_semantics = [#tpu.dimension_semantics<parallel>], iteration_bounds = array<i64: 2>, scalar_prefetch = 0 : i64, scratch_operands = 0 : i64, tpu.core_type = #tpu.core_type<tc>, window_params = [{transform_indices = @transform_0, window_bounds = array<i64: 32, 128>}, {pipeline_mode = #tpu.pipeline_mode<synchronous>, transform_indices = @transform_1, window_bounds = array<i64: 128, 128>}, {pipeline_mode = #tpu.pipeline_mode<synchronous>, transform_indices = @transform_2, window_bounds = array<i64: 1, 128>}, {pipeline_mode = #tpu.pipeline_mode<synchronous>, transform_indices = @transform_3, window_bounds = array<i64: 128, 128>}, {pipeline_mode = #tpu.pipeline_mode<synchronous>, transform_indices = @transform_4, window_bounds = array<i64: 1, 128>}, {transform_indices = @transform_5, window_bounds = array<i64: 32, 128>}]} {
    %c0 = arith.constant 0 : index
    %c0_0 = arith.constant 0 : index
    %0 = vector.load %arg1[%c0, %c0_0] : memref<32x128xf32, #tpu.memory_space<vmem>>, vector<32x128xf32>
    %c0_1 = arith.constant 0 : index
    %c0_2 = arith.constant 0 : index
    %1 = vector.load %arg2[%c0_1, %c0_2] : memref<128x128xf32, #tpu.memory_space<vmem>>, vector<128x128xf32>
    %cst = arith.constant dense<0.000000e+00> : vector<32x128xf32>
    %2 = tpu.matmul %0, %1, %cst {dimension_numbers = #tpu.dot_dimension_numbers<[1], [0], [0], [1], [0, 0, 1, 1], [], []>} : vector<32x128xf32>, vector<128x128xf32>, vector<32x128xf32> -> vector<32x128xf32>
    %c0_3 = arith.constant 0 : index
    %c0_4 = arith.constant 0 : index
    %3 = vector.load %arg3[%c0_3, %c0_4] : memref<1x128xf32, #tpu.memory_space<vmem>>, vector<1x128xf32>
    %4 = vector.broadcast %3 : vector<1x128xf32> to vector<32x128xf32>
    %5 = arith.addf %2, %4 : vector<32x128xf32>
    %cst_5 = arith.constant 0.000000e+00 : f32
    %6 = vector.broadcast %cst_5 : f32 to vector<32x128xf32>
    %7 = arith.subf %6, %5 : vector<32x128xf32>
    %8 = math.exp %7 : vector<32x128xf32>
    %cst_6 = arith.constant 1.000000e+00 : f32
    %9 = vector.broadcast %cst_6 : f32 to vector<32x128xf32>
    %10 = arith.addf %9, %8 : vector<32x128xf32>
    %11 = tpu.reciprocal %10 : vector<32x128xf32> -> vector<32x128xf32>
    %12 = arith.mulf %5, %11 : vector<32x128xf32>
    %c0_7 = arith.constant 0 : index
    %c0_8 = arith.constant 0 : index
    %13 = vector.load %arg4[%c0_7, %c0_8] : memref<128x128xf32, #tpu.memory_space<vmem>>, vector<128x128xf32>
    %cst_9 = arith.constant dense<0.000000e+00> : vector<32x128xf32>
    %14 = tpu.matmul %12, %13, %cst_9 {dimension_numbers = #tpu.dot_dimension_numbers<[1], [0], [0], [1], [0, 0, 1, 1], [], []>} : vector<32x128xf32>, vector<128x128xf32>, vector<32x128xf32> -> vector<32x128xf32>
    %c0_10 = arith.constant 0 : index
    %c0_11 = arith.constant 0 : index
    %15 = vector.load %arg5[%c0_10, %c0_11] : memref<1x128xf32, #tpu.memory_space<vmem>>, vector<1x128xf32>
    %16 = vector.broadcast %15 : vector<1x128xf32> to vector<32x128xf32>
    %17 = arith.addf %14, %16 : vector<32x128xf32>
    %cst_12 = arith.constant 0.000000e+00 : f32
    %18 = vector.broadcast %cst_12 : f32 to vector<32x128xf32>
    %19 = arith.subf %18, %17 : vector<32x128xf32>
    %20 = math.exp %19 : vector<32x128xf32>
    %cst_13 = arith.constant 1.000000e+00 : f32
    %21 = vector.broadcast %cst_13 : f32 to vector<32x128xf32>
    %22 = arith.addf %21, %20 : vector<32x128xf32>
    %23 = tpu.reciprocal %22 : vector<32x128xf32> -> vector<32x128xf32>
    %24 = arith.mulf %17, %23 : vector<32x128xf32>
    %25 = arith.addf %0, %24 : vector<32x128xf32>
    %c0_14 = arith.constant 0 : index
    %c0_15 = arith.constant 0 : index
    %26 = vector.load %arg6[%c0_14, %c0_15] : memref<32x128xf32, #tpu.memory_space<vmem>>, vector<32x128xf32>
    tpu.vector_store %arg6[%c0_14, %c0_15], %25 {strides = array<i32>} : memref<32x128xf32, #tpu.memory_space<vmem>>, vector<32x128xf32>,
    return
  }
  func.func @transform_0(%arg0: i32) -> (i32, i32) {
    %c0_i32 = arith.constant 0 : i32
    %c0_i32_0 = arith.constant 0 : i32
    return %arg0, %c0_i32 : i32, i32
  }
  func.func @transform_1(%arg0: i32) -> (i32, i32) {
    %c0_i32 = arith.constant 0 : i32
    %c0_i32_0 = arith.constant 0 : i32
    %c0_i32_1 = arith.constant 0 : i32
    return %c0_i32, %c0_i32_0 : i32, i32
  }
  func.func @transform_2(%arg0: i32) -> (i32, i32) {
    %c0_i32 = arith.constant 0 : i32
    %c0_i32_0 = arith.constant 0 : i32
    %c0_i32_1 = arith.constant 0 : i32
    return %c0_i32, %c0_i32_0 : i32, i32
  }
  func.func @transform_3(%arg0: i32) -> (i32, i32) {
    %c0_i32 = arith.constant 0 : i32
    %c0_i32_0 = arith.constant 0 : i32
    %c0_i32_1 = arith.constant 0 : i32
    return %c0_i32, %c0_i32_0 : i32, i32
  }
  func.func @transform_4(%arg0: i32) -> (i32, i32) {
    %c0_i32 = arith.constant 0 : i32
    %c0_i32_0 = arith.constant 0 : i32
    %c0_i32_1 = arith.constant 0 : i32
    return %c0_i32, %c0_i32_0 : i32, i32
  }
  func.func @transform_5(%arg0: i32) -> (i32, i32) {
    %c0_i32 = arith.constant 0 : i32
    %c0_i32_0 = arith.constant 0 : i32
    return %arg0, %c0_i32 : i32, i32
  }
}

</mosaic_0001>

<bundles_post_ra>
// kernel: tpu_custom_call.1
= control target key start
LH: loop header
LB: loop body
LE: loop exit
PB: predicated region body
PF: predicated region fallthrough
CT: control target
= control target key end

     0   :  { %10 = vsyncpa [#allocation3], 0  ;;  %s1352_s0 = inlined_call_operand.hbm [shape: f32[50,128], index: 0, kind: input, shape index: {}]   ;;  %s1353_s1 = inlined_call_operand.hbm [shape: f32[128,128], index: 1, kind: input, shape index: {}]   ;;  %s1354_s2 = inlined_call_operand.vmem [shape: f32[1,128], index: 2, kind: input, shape index: {}]   ;;  %s1355_s3 = inlined_call_operand.hbm [shape: f32[128,128], index: 3, kind: input, shape index: {}]   ;;  %s1356_s4 = inlined_call_operand.vmem [shape: f32[1,128], index: 4, kind: input, shape index: {}]   ;;  %s1357_s5 = inlined_call_operand.hbm [shape: f32[50,128], index: 5, kind: output, shape index: {}]  }
   0x1   :  { %12 = vsyncpa [#allocation3 + $0x1], 0 }
   0x2   :  { %13 = vsyncpa [#allocation6], 0 }
   0x3   :  { %14 = vsyncpa [#allocation4], 0 }
   0x4   :  { %16 = vsyncpa [#allocation4 + $0x1], 0  ;;  %s1108_s18 = smov 0   ;;  %s1110_s19 = smov 0  }
   0x5   :  { %s1112_s20 = smov 0   ;;  %s1114_s21 = smov 0  }
   0x6 LB: > { %s1129_s22 = sadd.s32 4294967295, %s1066_s21   ;;  %s676_s23 = sadd.s32 4294967294, %s1066_s21   ;;  %s1066_s21 = sphi %s1114_s21, %s1374_s21   ;;  %s1062_s20 = sphi %s1112_s20, %s1373_s20   ;;  %s1058_s19 = sphi %s1110_s19, %s1372_s19   ;;  %s1054_s18 = sphi %s1108_s18, %s1371_s18  }
   0x7   : > { %s1133_s24 = sadd.s32 1, %s1066_s21   ;;  %s29_s25 = sadd.s32 1, %s1062_s20 }
   0x8   : > { %s26_s26 = ssub.s32 %s1066_s21, %s1133_s24  ;;  %p36_p0 = scmp.ne.s32.totalorder %s1062_s20, %s1058_s19 }
   0x9   : > { %p27_p1 = scmp.eq.s32.totalorder %s26_s26, 0  ;;  %p37_p2 = scmp.eq.s32.totalorder %s1066_s21, 0 }
   0xa   : > { %p42_p3 = scmp.ne.s32.totalorder %s1058_s19, %s1054_s18  ;;  %p1358_p4 = scmp.eq.s32.totalorder %s1129_s22, 0 }
   0xb   : > { %s1145_s27 = scalar_select %p27_p1, %s1062_s20, %s29_s25  }
   0xc   : > { %p1147_p5 = por %p37_p2, %p36_p0  ;;  %p1153_p6 = por %p1358_p4, %p42_p3 }
   0xd   : > { %p150_p7 = scmp.eq.s32.totalorder %s1129_s22, 1  ;;  %p156_p8 = scmp.eq.s32.totalorder %s676_s23, 1 }
   0xe   : > { %s1361_s29 = scalar_select %p1153_p6, 1, 0 }
   0xf   : > { %p677_p9 = scmp.ge.s32.totalorder %s1066_s21, 1  ;;  %p163_p10 = scmp.lt.s32.totalorder %s1066_s21, 3 }
  0x10   : > { %p1160_p11 = por %p150_p7, %p36_p0  ;;  %p1164_p12 = por %p156_p8, %p42_p3 }
  0x11   : > { %p1168_p13 = pnand %p677_p9, %p163_p10  ;;  %s1068_s8 = smov [#allocation5]  }
  0x12   : > { %s1362_s30 = scalar_select %p1160_p11, 1, 0 }
  0x13   : > { %s1363_s6 = scalar_select %p1164_p12, 1, 0 }
  0x14   : > { %p832_p1 = pneg %p1168_p13  ;;  %s175_s9 = sshll.u32 %s1068_s8, 4  ;;  %s176_s9 = int_to_ptr.vmem [resolvable:$true] %s175_s9 }
  0x15   : > { %s1069_s11 = smov [#allocation7]   ;;  %s931_s13 = scalar_lea.vmem %s176_s9, 2048 }
  0x16   : > { %p1176_p2 = pnand %p832_p1, %p1358_p4  ;;  %s191_s12 = sshll.u32 %s1069_s11, 4  ;;  %s192_s12 = int_to_ptr.vmem [resolvable:$true] %s191_s12 }
  0x17   : > { %p932_p3 = scmp.ne.s32.totalorder %s176_s9, %s931_s13  ;;  %p939_p9 = scmp.lt.s32.totalorder %s176_s9, %s176_s9 }
  0x18   : > { %p922_p0 = pneg %p1176_p2  ;;  %p940_p10 = scmp.lt.s32.totalorder %s931_s13, %s931_s13 }
  0x1a   : > { %p934_p7 = pnand %p932_p3, %p922_p0  ;;  %p941_p12 = por %p940_p10, %p939_p9 }
  0x1c   : > { %p935_p8 = pneg %p934_p7 }
  0x1e   : > { %p942_p1 = pnand %p941_p12, %p935_p8 }
  0x20   : > { %945 = shalt.err (!%p942_p1)
}
  0x21   : > { %s1070_s14 = smov 128   ;;  %s1071_s15 = smov 8  }
  0x22   : > { %835 = dma.hbm_to_vmem [thread:$0]  (!%p1176_p2), %s1353_s1, 2048, %s176_s9, [#allocation6], %s1070_s14, %s1070_s14, %s1071_s15  }
  0x23   : > { %s957_s23 = scalar_lea.vmem %s192_s12, 2048  ;;  %p965_p11 = scmp.lt.s32.totalorder %s192_s12, %s192_s12 }
  0x24   : > { %p958_p4 = scmp.ne.s32.totalorder %s192_s12, %s957_s23  ;;  %p966_p6 = scmp.lt.s32.totalorder %s957_s23, %s957_s23 }
  0x26   : > { %p960_p3 = pnand %p958_p4, %p922_p0  ;;  %p967_p9 = por %p966_p6, %p965_p11 }
  0x28   : > { %p961_p7 = pneg %p960_p3 }
  0x2a   : > { %p968_p12 = pnand %p967_p9, %p961_p7 }
  0x2c   : > { %971 = shalt.err (!%p968_p12)
}
  0x2d   : > { %838 = dma.hbm_to_vmem [thread:$0]  (!%p1176_p2), %s1355_s3, 2048, %s192_s12, [#allocation6], %s1070_s14, %s1070_s14, %s1071_s15  }
  0x2e   : > { %p680_p8 = scmp.ge.s32.totalorder %s1066_s21, 2 }
  0x30   : > { %204 = sbr.rel (%p680_p8) target bundleno = 85 (0x55), region = 32 }
  0x35   : > { %207 = sbr.rel (!%p1147_p5) target bundleno = 85 (0x55), region = 36  ;;  %s208_s8 = sand.u32 (%p1147_p5), 1, %s1062_s20  }
  0x36   : > { %s682_s9 = sshll.u32 (%p1147_p5), %s1066_s21, 2  ;;  %s681_s11 = sshll.u32 (%p1147_p5), %s208_s8, 5 }
  0x37   : > { %s214_s13 = ssub.s32 (%p1147_p5), 7, %s682_s9  ;;  %s1208_s14 = scalar_lea.sflag (%p1147_p5), [#allocation3], %s208_s8 }
  0x38   : > { %p215_p4 = scmp.lt.s32.totalorder (%p1147_p5), %s214_s13, 4  ;;  %s212_s15 = scalar_lea.vmem (%p1147_p5), [#allocation2], %s681_s11 }
  0x3a   : > { %s1376_s13 = smov (!%p215_p4, %s214_s13), 4 }
  0x3b   : > { %s1205_s10 = sshll.u32 %s1376_s13, 7 }
  0x3c   : > { %s219_s12 = ssub.s32 512, %s1205_s10 }
  0x3d   : > { %220 = vsyncadd %s1208_s14, %s219_s12  ;;  %p684_p5 = scmp.ne.s32.totalorder %s1205_s10, 0  ;;  %s704_s28 = sshll.u32 %s1066_s21, 9 }
  0x3e   : > { %s1216_s23 = scalar_lea.hbm %s1352_s0, %s704_s28  ;;  %s225_s25 = sshll.u32 %s212_s15, 4  ;;  %s1218_s25 = int_to_ptr.vmem [resolvable:$true] %s225_s25 }
  0x3f   : > { %s972_s26 = scalar_lea.hbm %s1216_s23, %s1205_s10  ;;  %s976_s11 = scalar_lea.hbm %s1352_s0, 896 }
  0x40   : > { %p973_p6 = scmp.ne.s32.totalorder %s1216_s23, %s972_s26  ;;  %p977_p0 = scmp.lt.s32.totalorder %s1216_s23, %s1352_s0 }
  0x41   : > { %p978_p10 = scmp.lt.s32.totalorder %s976_s11, %s972_s26 }
  0x42   : > { %p974_p11 = pnand %p973_p6, %p684_p5 }
  0x43   : > { %p979_p1 = por %p978_p10, %p977_p0 }
  0x44   : > { %p975_p2 = pneg %p974_p11 }
  0x46   : > { %p980_p3 = pnand %p979_p1, %p975_p2 }
  0x48   : > { %983 = shalt.err (!%p980_p3)
}
  0x49   : > { %s984_s15 = scalar_lea.vmem %s1218_s25, %s1205_s10  ;;  %s1072_s28 = smov [#allocation2]  }
  0x4a   : > { %p985_p7 = scmp.ne.s32.totalorder %s1218_s25, %s984_s15  ;;  %s988_s16 = sshll.u32 %s1072_s28, 4  ;;  %s989_s16 = int_to_ptr.vmem [resolvable:$false] %s988_s16 }
  0x4b   : > { %s990_s17 = scalar_lea.vmem %s989_s16, 1024  ;;  %p991_p4 = scmp.lt.s32.totalorder %s1218_s25, %s989_s16 }
  0x4c   : > { %p986_p9 = pnand %p985_p7, %p684_p5  ;;  %p992_p6 = scmp.lt.s32.totalorder %s990_s17, %s984_s15 }
  0x4e   : > { %p987_p12 = pneg %p986_p9  ;;  %p993_p11 = por %p992_p6, %p991_p4 }
  0x50   : > { %p994_p0 = pnand %p993_p11, %p987_p12 }
  0x52   : > { %997 = shalt.err (!%p994_p0)
}
  0x53   : > { %s1073_s26 = smov 128   ;;  %s1074_s8 = smov 8  }
  0x54   : > { %231 = dma.hbm_to_vmem [thread:$0]  (%p684_p5), %s1216_s23, %s1205_s10, %s1218_s25, %s1208_s14, %s1073_s26, %s1073_s26, %s1074_s8  }
  0x55 PF: > { %237 = sbr.rel (%p1168_p13) target bundleno = 628 (0x274), region = 40  ;;  %s1247_s9 = sand.u32 (!%p1168_p13), 1, %s1058_s19  }
  0x56   : > { %s689_s11 = sshll.u32 (!%p1168_p13), %s1247_s9, 5  ;;  %s240_s13 = scalar_lea.sflag (!%p1168_p13), [#allocation3], %s1247_s9 }
  0x57   : > { %s1253_s12 = scalar_lea.vmem (!%p1168_p13), [#allocation2], %s689_s11  ;;  %p1366_p2 = scmp.ne.s32.totalorder (!%p1168_p13), %s1361_s29, 0 }
  0x5a   : > { %1041 = dma.done.wait (%p1366_p2), %s240_s13, 512  }
  0x5b   : > { %1043 = vsyncadd (%p1366_p2), %s240_s13, 4294966784  ;;  %p1367_p5 = scmp.eq.s32.totalorder %s1129_s22, 0 }
  0x5d   : > { %1045 = dma.done.wait (%p1367_p5), [#allocation6], 4096   ;;  %p1368_p13 = pmov %p1367_p5 }
  0x5e   : > { %v307_v0 = vld [vmem:[#allocation5 + $0x78] sm:$0xff]  ;;  %v306_v1 = vld [vmem:[#allocation5 + $0x70] sm:$0xff]  ;;  %v305_v2 = vld [vmem:[#allocation5 + $0x68] sm:$0xff]  ;;  %s277_s23 = scalar_lea.vmem [#allocation8], %s689_s11  ;;  %s565_s25 = scalar_lea.sflag [#allocation4], %s1247_s9 }
  0x5f   : > { %1047 = vsyncadd (%p1368_p13), [#allocation6], 4294963200  ;;  %746 = vmatprep.subr.mxu0 %v307_v0  ;;  %v304_v3 = vld [vmem:[#allocation5 + $0x60] sm:$0xff]  ;;  %v303_v5 = vld [vmem:[#allocation5 + $0x58] sm:$0xff]  ;;  %p1369_p10 = scmp.ne.s32.totalorder %s1362_s30, 0 }
  0x60   : > { %747 = vmatpush3.msra.mxu0 %v307_v0  ;;  %v1264_v4 = vld [vmem:[%s1253_s12] sm:$0xff]  ;;  %v302_v6 = vld [vmem:[#allocation5 + $0x50] sm:$0xff]  ;;  %v301_v7 = vld [vmem:[#allocation5 + $0x48] sm:$0xff]  ;;  %s696_s15 = sshll.u32 (%p1369_p10), %s1129_s22, 2 }
  0x61   : > { %748 = vmatprep.subr.mxu0 %v306_v1  ;;  %778 = vmatprep.mubr.f32.mxu0 %v1264_v4  ;;  %v300_v8 = vld [vmem:[#allocation5 + $0x40] sm:$0xff]  ;;  %v299_v9 = vld [vmem:[#allocation5 + $0x38] sm:$0xff]  ;;  %v298_v10 = vld [vmem:[#allocation5 + $0x30] sm:$0xff]  ;;  %s573_s28 = ssub.s32 (%p1369_p10), 7, %s696_s15 }
  0x62   : > { %749 = vmatpush3.msra.mxu0 %v306_v1  ;;  %v297_v11 = vld [vmem:[#allocation5 + $0x28] sm:$0xff]  ;;  %v296_v12 = vld [vmem:[#allocation5 + $0x20] sm:$0xff]  ;;  %v295_v13 = vld [vmem:[#allocation5 + $0x18] sm:$0xff]  ;;  %p574_p1 = scmp.lt.s32.totalorder (%p1369_p10), %s573_s28, 4 }
  0x63   : > { %750 = vmatprep.subr.mxu0 %v305_v2  ;;  %v294_v14 = vld [vmem:[#allocation5 + $0x10] sm:$0xff]  ;;  %v293_v15 = vld [vmem:[#allocation5 + $0x8] sm:$0xff]  ;;  %v292_v16 = vld [vmem:[#allocation5] sm:$0xff] }
  0x64   : > { %751 = vmatpush3.msra.mxu0 %v305_v2  ;;  %v1268_v17 = vld [vmem:[%s1253_s12 + $0x8] sm:$0xff]  ;;  %v1271_v18 = vld [vmem:[%s1253_s12 + $0x10] sm:$0xff]  ;;  %v1276_v19 = vld [vmem:[%s1253_s12 + $0x18] sm:$0xff] }
  0x65   : > { %752 = vmatprep.subr.mxu0 %v304_v3  ;;  %v439_v20 = vld [vmem:[#allocation7 + $0x78] sm:$0xff]  ;;  %v438_v21 = vld [vmem:[#allocation7 + $0x70] sm:$0xff]  ;;  %v437_v22 = vld [vmem:[#allocation7 + $0x68] sm:$0xff] }
  0x66   : > { %753 = vmatpush3.msra.mxu0 %v304_v3  ;;  %784 = vmatprep.subr.mxu1 %v439_v20  ;;  %v436_v23 = vld [vmem:[#allocation7 + $0x60] sm:$0xff]  ;;  %v435_v24 = vld [vmem:[#allocation7 + $0x58] sm:$0xff]  ;;  %v434_v25 = vld [vmem:[#allocation7 + $0x50] sm:$0xff] }
  0x67   : > { %754 = vmatprep.subr.mxu0 %v303_v5  ;;  %785 = vmatpush3.msra.mxu1 %v439_v20  ;;  %v433_v26 = vld [vmem:[#allocation7 + $0x48] sm:$0xff]  ;;  %v432_v27 = vld [vmem:[#allocation7 + $0x40] sm:$0xff]  ;;  %v431_v28 = vld [vmem:[#allocation7 + $0x38] sm:$0xff] }
  0x68   : > { %755 = vmatpush3.msra.mxu0 %v303_v5  ;;  %786 = vmatprep.subr.mxu1 %v438_v21  ;;  %v430_v29 = vld [vmem:[#allocation7 + $0x30] sm:$0xff]  ;;  %v429_v30 = vld [vmem:[#allocation7 + $0x28] sm:$0xff]  ;;  %v428_v31 = vld [vmem:[#allocation7 + $0x20] sm:$0xff] }
  0x69   : > { %756 = vmatprep.subr.mxu0 %v302_v6  ;;  %787 = vmatpush3.msra.mxu1 %v438_v21  ;;  %v427_v32 = vld [vmem:[#allocation7 + $0x18] sm:$0xff]  ;;  %v426_v33 = vld [vmem:[#allocation7 + $0x10] sm:$0xff]  ;;  %v425_v34 = vld [vmem:[#allocation7 + $0x8] sm:$0xff] }
  0x6a   : > { %757 = vmatpush3.msra.mxu0 %v302_v6  ;;  %788 = vmatprep.subr.mxu1 %v437_v22  ;;  %v424_v35 = vld [vmem:[#allocation7] sm:$0xff] }
  0x6b   : > { %758 = vmatprep.subr.mxu0 %v301_v7  ;;  %789 = vmatpush3.msra.mxu1 %v437_v22  ;;  %v693_v36 = vld [vmem:[%s1354_s2] ss:$0 sm:$0xff] }
  0x6c   : > { %759 = vmatpush3.msra.mxu0 %v301_v7  ;;  %790 = vmatprep.subr.mxu1 %v436_v23  ;;  %v694_v6 = vld [vmem:[%s1356_s4] ss:$0 sm:$0xff] }
  0x6d   : > { %760 = vmatprep.subr.mxu0 %v300_v8  ;;  %791 = vmatpush3.msra.mxu1 %v436_v23 }
  0x6e   : > { %761 = vmatpush3.msra.mxu0 %v300_v8  ;;  %792 = vmatprep.subr.mxu1 %v435_v24 }
  0x6f   : > { %762 = vmatprep.subr.mxu0 %v299_v9  ;;  %793 = vmatpush3.msra.mxu1 %v435_v24 }
  0x70   : > { %763 = vmatpush3.msra.mxu0 %v299_v9  ;;  %794 = vmatprep.subr.mxu1 %v434_v25 }
  0x71   : > { %764 = vmatprep.subr.mxu0 %v298_v10  ;;  %795 = vmatpush3.msra.mxu1 %v434_v25 }
  0x72   : > { %765 = vmatpush3.msra.mxu0 %v298_v10  ;;  %796 = vmatprep.subr.mxu1 %v433_v26 }
  0x73   : > { %766 = vmatprep.subr.mxu0 %v297_v11  ;;  %797 = vmatpush3.msra.mxu1 %v433_v26 }
  0x74   : > { %767 = vmatpush3.msra.mxu0 %v297_v11  ;;  %798 = vmatprep.subr.mxu1 %v432_v27 }
  0x75   : > { %768 = vmatprep.subr.mxu0 %v296_v12  ;;  %799 = vmatpush3.msra.mxu1 %v432_v27 }
  0x76   : > { %769 = vmatpush3.msra.mxu0 %v296_v12  ;;  %800 = vmatprep.subr.mxu1 %v431_v28 }
  0x77   : > { %770 = vmatprep.subr.mxu0 %v295_v13  ;;  %801 = vmatpush3.msra.mxu1 %v431_v28 }
  0x78   : > { %771 = vmatpush3.msra.mxu0 %v295_v13  ;;  %802 = vmatprep.subr.mxu1 %v430_v29 }
  0x79   : > { %772 = vmatprep.subr.mxu0 %v294_v14  ;;  %803 = vmatpush3.msra.mxu1 %v430_v29 }
  0x7a   : > { %773 = vmatpush3.msra.mxu0 %v294_v14  ;;  %804 = vmatprep.subr.mxu1 %v429_v30 }
  0x7b   : > { %774 = vmatprep.subr.mxu0 %v293_v15  ;;  %805 = vmatpush3.msra.mxu1 %v429_v30 }
  0x7c   : > { %775 = vmatpush3.msra.mxu0 %v293_v15  ;;  %806 = vmatprep.subr.mxu1 %v428_v31 }
  0x7d   : > { %776 = vmatprep.subr.mxu0 %v292_v16  ;;  %807 = vmatpush3.msra.mxu1 %v428_v31 }
  0x7e   : > { %777 = vmatpush3.msra.mxu0 %v292_v16  ;;  %808 = vmatprep.subr.mxu1 %v427_v32 }
  0x7f   : > { %779 = vmatmul.mubr.f32.vlgmr.msra.gmra.mxu0 %v1268_v17  ;;  %809 = vmatpush3.msra.mxu1 %v427_v32 }
  0x80   : > { %781 = vmatprep.mubr.f32.mxu0 %v1271_v18  ;;  %810 = vmatprep.subr.mxu1 %v426_v33 }
  0x81   : > { %811 = vmatpush3.msra.mxu1 %v426_v33 }
  0x82   : > { %812 = vmatprep.subr.mxu1 %v425_v34 }
  0x83   : > { %782 = vmatmul.mubr.f32.gmra.mxu0 %v1276_v19  ;;  %813 = vmatpush3.msra.mxu1 %v425_v34 }
  0x84   : > { %814 = vmatprep.subr.mxu1 %v424_v35 }
  0x85   : > { %815 = vmatpush3.msra.mxu1 %v424_v35 }
 0x13f   : > { %v780_v37 = vpop.f32.mrf.mxu0 }
 0x140   : > { %v387_v38 = vadd.f32 %v780_v37, %v693_v36 }
 0x141   : > { %v381_v39 = vpop.f32.mrf.mxu0 }
 0x142   : > { %v401_v40 = vsub.f32 0.0, %v387_v38  ;;  %v382_v41 = vadd.f32 %v693_v36, %v381_v39 }
 0x143   : > { %v783_v42 = vpop.f32.mrf.mxu0 }
 0x144   : > { %v406_v43 = vmul.f32 1.442695, %v401_v40  ;;  %v400_v44 = vsub.f32 0.0, %v382_v41  ;;  %v397_v45 = vadd.f32 %v783_v42, %v693_v36 }
 0x145   : > { %v391_v46 = vpop.f32.mrf.mxu0 }
 0x146   : > { %888 = vpow2.f32 %v406_v43  ;;  %v404_v47 = vmul.f32 1.442695, %v400_v44  ;;  %v403_v48 = vsub.f32 0.0, %v397_v45  ;;  %v392_v49 = vadd.f32 %v693_v36, %v391_v46 }
 0x148   : > { %890 = vpow2.f32 %v404_v47  ;;  %v410_v50 = vmul.f32 1.442695, %v403_v48  ;;  %v402_v51 = vsub.f32 0.0, %v392_v49 }
 0x14a   : > { %892 = vpow2.f32 %v410_v50  ;;  %v408_v52 = vmul.f32 1.442695, %v402_v51 }
 0x14c   : > { %894 = vpow2.f32 %v408_v52 }
 0x153   : > { %v889_v53 = vpop.eup %888 }
 0x154   : > { %v413_v54 = vadd.f32 1.0, %v889_v53 }
 0x155   : > { %v891_v55 = vpop.eup %890 }
 0x156   : > { %v412_v56 = vadd.f32 1.0, %v891_v55  ;;  %896 = vrcp.f32 %v413_v54 }
 0x157   : > { %v893_v57 = vpop.eup %892 }
 0x158   : > { %898 = vrcp.f32 %v412_v56  ;;  %v415_v58 = vadd.f32 1.0, %v893_v57 }
 0x159   : > { %v895_v59 = vpop.eup %894 }
 0x15a   : > { %v414_v60 = vadd.f32 1.0, %v895_v59  ;;  %900 = vrcp.f32 %v415_v58 }
 0x15c   : > { %902 = vrcp.f32 %v414_v60 }
 0x163   : > { %v897_v61 = vpop.eup %896 }
 0x164   : > { %v421_v0 = vmul.f32 %v897_v61, %v387_v38 }
 0x165   : > { %v899_v62 = vpop.eup %898 }
 0x166   : > { %v420_v63 = vmul.f32 %v899_v62, %v382_v41 }
 0x167   : > { %v901_v1 = vpop.eup %900 }
 0x168   : > { %816 = vmatprep.mubr.f32.mxu1 %v420_v63  ;;  %v423_v5 = vmul.f32 %v901_v1, %v397_v45 }
 0x169   : > { %v903_v2 = vpop.eup %902  ;;  %817 = vmatmul.mubr.f32.vlgmr.msra.gmra.mxu1 %v421_v0 }
 0x16a   : > { %v422_v3 = vmul.f32 %v903_v2, %v392_v49 }
 0x16c   : > { %819 = vmatprep.mubr.f32.mxu1 %v422_v3 }
 0x16d   : > { %820 = vmatmul.mubr.f32.gmra.mxu1 %v423_v5 }
 0x229   : > { %v818_v7 = vpop.f32.mrf.mxu1 }
 0x22a   : > { %v519_v8 = vadd.f32 %v818_v7, %v694_v6 }
 0x22b   : > { %v513_v9 = vpop.f32.mrf.mxu1 }
 0x22c   : > { %v533_v10 = vsub.f32 0.0, %v519_v8  ;;  %v514_v11 = vadd.f32 %v694_v6, %v513_v9 }
 0x22d   : > { %v821_v12 = vpop.f32.mrf.mxu1 }
 0x22e   : > { %v538_v13 = vmul.f32 1.442695, %v533_v10  ;;  %v532_v14 = vsub.f32 0.0, %v514_v11  ;;  %v529_v15 = vadd.f32 %v821_v12, %v694_v6 }
 0x22f   : > { %v523_v16 = vpop.f32.mrf.mxu1 }
 0x230   : > { %904 = vpow2.f32 %v538_v13  ;;  %v536_v20 = vmul.f32 1.442695, %v532_v14  ;;  %v535_v21 = vsub.f32 0.0, %v529_v15  ;;  %v524_v22 = vadd.f32 %v694_v6, %v523_v16 }
 0x232   : > { %906 = vpow2.f32 %v536_v20  ;;  %v542_v23 = vmul.f32 1.442695, %v535_v21  ;;  %v534_v24 = vsub.f32 0.0, %v524_v22 }
 0x234   : > { %908 = vpow2.f32 %v542_v23  ;;  %v540_v25 = vmul.f32 1.442695, %v534_v24 }
 0x236   : > { %910 = vpow2.f32 %v540_v25 }
 0x23d   : > { %v905_v26 = vpop.eup %904 }
 0x23e   : > { %v545_v27 = vadd.f32 1.0, %v905_v26 }
 0x23f   : > { %v907_v28 = vpop.eup %906 }
 0x240   : > { %912 = vrcp.f32 %v545_v27  ;;  %v544_v29 = vadd.f32 1.0, %v907_v28 }
 0x241   : > { %v909_v30 = vpop.eup %908 }
 0x242   : > { %914 = vrcp.f32 %v544_v29  ;;  %v547_v31 = vadd.f32 1.0, %v909_v30 }
 0x243   : > { %v911_v32 = vpop.eup %910 }
 0x244   : > { %916 = vrcp.f32 %v547_v31  ;;  %v546_v33 = vadd.f32 1.0, %v911_v32 }
 0x246   : > { %918 = vrcp.f32 %v546_v33 }
 0x24d   : > { %v913_v34 = vpop.eup %912 }
 0x24e   : > { %v553_v35 = vmul.f32 %v913_v34, %v519_v8 }
 0x24f   : > { %v915_v36 = vpop.eup %914 }
 0x250   : > { %v557_v37 = vadd.f32 %v553_v35, %v1268_v17  ;;  %v552_v38 = vmul.f32 %v915_v36, %v514_v11 }
 0x251   : > { %v917_v39 = vpop.eup %916 }
 0x252   : > { %561 = vst [vmem:[%s277_s23 + $0x8] sm:$0xff] %v557_v37  ;;  %v556_v40 = vadd.f32 %v552_v38, %v1264_v4  ;;  %v555_v41 = vmul.f32 %v917_v39, %v529_v15 }
 0x253   : > { %v919_v42 = vpop.eup %918 }
 0x254   : > { %560 = vst [vmem:[%s277_s23] sm:$0xff] %v556_v40  ;;  %v559_v43 = vadd.f32 %v555_v41, %v1276_v19  ;;  %v554_v44 = vmul.f32 %v919_v42, %v524_v22  ;;  %571 = sbr.rel (!%p1369_p10) target bundleno = 628 (0x274), region = 56 }
 0x256   : > { %563 = vst [vmem:[%s277_s23 + $0x18] sm:$0xff] %v559_v43  ;;  %v558_v45 = vadd.f32 %v554_v44, %v1271_v18 }
 0x258   : > { %562 = vst [vmem:[%s277_s23 + $0x10] sm:$0xff] %v558_v45 }
 0x259   : > { %s1378_s28 = smov (!%p574_p1, %s573_s28), 4 }
 0x25a   : > { %s1295_s16 = sshll.u32 %s1378_s28, 7 }
 0x25b   : > { %s578_s17 = ssub.s32 512, %s1295_s16 }
 0x25c   : > { %579 = vsyncadd %s565_s25, %s578_s17  ;;  %p698_p3 = scmp.ne.s32.totalorder %s1295_s16, 0  ;;  %s705_s26 = sshll.u32 %s1129_s22, 9 }
 0x25d   : > { %s1305_s11 = scalar_lea.hbm %s1357_s5, %s705_s26  ;;  %s584_s13 = sshll.u32 %s277_s23, 4  ;;  %s1307_s13 = int_to_ptr.vmem [resolvable:$true] %s584_s13 }
 0x25e   : > { %s998_s12 = scalar_lea.vmem %s1307_s13, %s1295_s16  ;;  %s1075_s29 = smov [#allocation8]  }
 0x25f   : > { %p999_p7 = scmp.ne.s32.totalorder %s1307_s13, %s998_s12  ;;  %s1002_s7 = sshll.u32 %s1075_s29, 4  ;;  %s1003_s7 = int_to_ptr.vmem [resolvable:$false] %s1002_s7 }
 0x260   : > { %s1004_s22 = scalar_lea.vmem %s1003_s7, 1024  ;;  %p1005_p4 = scmp.lt.s32.totalorder %s1307_s13, %s1003_s7 }
 0x261   : > { %p1000_p9 = pnand %p999_p7, %p698_p3  ;;  %p1006_p6 = scmp.lt.s32.totalorder %s1004_s22, %s998_s12 }
 0x263   : > { %p1001_p12 = pneg %p1000_p9  ;;  %p1007_p11 = por %p1006_p6, %p1005_p4 }
 0x265   : > { %p1008_p0 = pnand %p1007_p11, %p1001_p12 }
 0x267   : > { %1011 = shalt.err (!%p1008_p0)
}
 0x268   : > { %s1012_s10 = scalar_lea.hbm %s1305_s11, %s1295_s16  ;;  %s1016_s15 = scalar_lea.hbm %s1357_s5, 896 }
 0x269   : > { %p1013_p2 = scmp.ne.s32.totalorder %s1305_s11, %s1012_s10  ;;  %p1017_p10 = scmp.lt.s32.totalorder %s1305_s11, %s1357_s5 }
 0x26a   : > { %p1018_p1 = scmp.lt.s32.totalorder %s1016_s15, %s1012_s10 }
 0x26b   : > { %p1014_p5 = pnand %p1013_p2, %p698_p3 }
 0x26c   : > { %p1019_p7 = por %p1018_p1, %p1017_p10 }
 0x26d   : > { %p1015_p13 = pneg %p1014_p5 }
 0x26f   : > { %p1020_p9 = pnand %p1019_p7, %p1015_p13 }
 0x271   : > { %1023 = shalt.err (!%p1020_p9)
}
 0x272   : > { %s1076_s26 = smov 128   ;;  %s1077_s30 = smov 8  }
 0x273   : > { %590 = dma.vmem_to_hbm [thread:$0]  (%p698_p3), %s1307_s13, %s1295_s16, %s1305_s11, %s565_s25, %s1076_s26, %s1076_s26, %s1077_s30  }
 0x274 PF: > { %s599_s8 = sand.u32 1, %s1054_s18   ;;  %p1370_p12 = scmp.ne.s32.totalorder %s1363_s6, 0 }
 0x275   : > { %s600_s12 = scalar_lea.sflag [#allocation4], %s599_s8 }
 0x276   : > { %p840_p4 = pnand %p680_p8, %p1370_p12 }
 0x278   : > { %p841_p6 = pneg %p840_p4 }
 0x27a   : > { %1049 = dma.done.wait (%p841_p6), %s600_s12, 512  }
 0x27b   : > { %1051 = vsyncadd (%p841_p6), %s600_s12, 4294966784  ;;  %p19_p11 = scmp.ge.s32.totalorder %s1133_s24, 4   ;;  %s1371_s18 = smov %s1058_s19 }
 0x27c   : > { %s1372_s19 = smov %s1062_s20  ;;  %s1373_s20 = smov %s1145_s27 }
 0x27d   : > { %s1374_s21 = smov %s1133_s24  ;;  %21 = sbr.rel (!%p19_p11) target bundleno = 6 (0x6), region = 93 }
 0x282   :  { %605 = vsyncpa [#allocation3], 1 }
 0x283   :  { %607 = vsyncpa [#allocation3 + $0x1], 1 }
 0x284   :  { %608 = vsyncpa [#allocation6], 1 }
 0x285   :  { %609 = vsyncpa [#allocation4], 1 }
 0x286   :  { %611 = vsyncpa [#allocation4 + $0x1], 1 }

</bundles_post_ra>
